<compile_context>
chip_gen: v7x
topology: tpu7x:2x2x1
jax: 0.10.0
libtpu: 0.0.40
codegen_flags: <defaults>
</compile_context>

<pallas_src>
import jax
import jax.numpy as jnp
from jax.experimental import pallas as pl
from jax.experimental.pallas import tpu as pltpu

_LANE = 128
_MAX_TILE_ROWS = 1024   # large M tile amortizes per-step overhead & RHS re-push


def _round_up(x, m):
    return ((x + m - 1) // m) * m


# ----------------------------------------------------------------------------
# Plain-JAX glue (matches the PyTorch helpers)
# ----------------------------------------------------------------------------

def square_distance(src, dst):
    # src [B,N,C], dst [B,M,C] -> [B,N,M]
    dist = -2.0 * jnp.matmul(src, jnp.transpose(dst, (0, 2, 1)))
    dist = dist + jnp.sum(src ** 2, axis=-1)[:, :, None]
    dist = dist + jnp.sum(dst ** 2, axis=-1)[:, None, :]
    return dist


def index_points(points, idx):
    # points [B,S,C], idx [B,...] -> [B,...,C]
    return jax.vmap(lambda p, i: p[i])(points, idx)


def _interpolate_and_concat(xyz1, xyz2, points1, points2):
    """Channel-first inputs (PyTorch convention) -> [B, N, D1+D2] channel-last, bf16.

    Faithful to the reference: per-row z-score of the distances (torch.std is
    unbiased -> ddof=1), 3 nearest, UN-normalized reciprocal weights, weighted
    sum, concat with points1.  The full argsort is replaced by lax.top_k(3).
    """
    xyz1_t = jnp.transpose(xyz1, (0, 2, 1))          # [B,N,3]
    xyz2_t = jnp.transpose(xyz2, (0, 2, 1))          # [B,S,3]
    pts2_t = jnp.transpose(points2, (0, 2, 1))       # [B,S,D2]
    B, N, _ = xyz1_t.shape
    S = xyz2_t.shape[1]

    if S == 1:
        interpolated = jnp.broadcast_to(pts2_t, (B, N, pts2_t.shape[-1]))
    else:
        dists = square_distance(xyz1_t, xyz2_t)                       # [B,N,S] f32
        mean = jnp.mean(dists, axis=-1, keepdims=True)
        std = jnp.std(dists, axis=-1, keepdims=True, ddof=1)          # torch.std (unbiased)
        dists = (dists - mean) / std
        # 3 nearest neighbors via top_k (O(S)) instead of a full argsort.
        neg_d3, idx = jax.lax.top_k(-dists, 3)                        # [B,N,3]
        d3 = -neg_d3                                                  # ascending (smallest first)
        weight = 1.0 / (d3 + 1e-8)                                    # un-normalized, as in reference
        gathered = index_points(pts2_t, idx)                          # [B,N,3,D2]
        interpolated = jnp.sum(gathered * weight[..., None], axis=2)  # [B,N,D2]
    # TODO(synk): the reference's torch.isnan debug print/exit path is omitted
    # (NaN/Inf is possible if a row's distances are near-constant -> std ~ 0).

    if points1 is not None:
        pts1_t = jnp.transpose(points1, (0, 2, 1))                    # [B,N,D1]
        out = jnp.concatenate([pts1_t, interpolated], axis=-1)
    else:
        out = interpolated
    # Cast at the source so the bf16 cast fuses into the concat write:
    # the Pallas kernel then reads 2 bytes/elem straight from this buffer.
    return out.astype(jnp.bfloat16)


# ----------------------------------------------------------------------------
# Pallas kernel: fused per-point shared MLP (1x1 conv w/ folded BN + ReLU)
# ----------------------------------------------------------------------------

def _make_fp_mlp_kernel(num_layers):
    def kernel(x_ref, *args):
        out_ref = args[-1]
        params = args[:-1]                       # [w0, b0, w1, b1, ...]
        h = x_ref[0, :, :]                       # [tile_rows, c_in_pad] bf16
        acc = None
        for l in range(num_layers):
            w = params[2 * l][...]               # [cin_pad_l, cout_pad_l] bf16 (BN scale folded)
            b = params[2 * l + 1][...]           # [1, cout_pad_l] f32
            acc = jnp.dot(h, w, preferred_element_type=jnp.float32)   # bf16 MXU, f32 acc
            acc = jnp.maximum(acc + b, 0.0)                           # folded bias + ReLU, f32
            if l + 1 < num_layers:
                h = acc.astype(jnp.bfloat16)
        # Channel-first store: transpose the tile in VMEM (XLU work, hidden
        # under the mem-bound pipeline) so the wrapper never round-trips the
        # output through an XLA transpose.  tile_rows % 128 == 0 keeps the
        # store lane-dense (unmasked vst).
        out_ref[0, :, :] = acc.T.astype(out_ref.dtype)
    return kernel


def fp_mlp_pallas(x, params, *, max_tile_rows=_MAX_TILE_ROWS):
    """x: [B, N, C_in] (bf16 preferred).  params: list of
    (w[Cin,Cout] f32 with BN scale already folded, bias[1,Cout] f32).

    Returns [B, C_last, N] bf16 (channel-first; transpose done inside the kernel).
    Channels are zero-padded to multiples of 128 and rows to a multiple of the
    row tile only when needed; padding is sliced off on return.
    """
    B, N, c_in = x.shape
    num_layers = len(params)

    # --- pad channel dims to multiples of 128 (full-vreg loads / lane-dense MXU)
    c_in_pad = _round_up(c_in, _LANE)
    padded = []
    last_pad = c_in_pad
    for (w, b) in params:
        cin_l, cout_l = w.shape
        cout_pad = _round_up(cout_l, _LANE)
        if (cin_l, cout_l) == (last_pad, cout_pad):
            w_p = w.astype(jnp.bfloat16)
        else:
            w_p = jnp.zeros((last_pad, cout_pad), jnp.bfloat16)
            w_p = w_p.at[:cin_l, :cout_l].set(w.astype(jnp.bfloat16))
        if cout_l == cout_pad:
            b_p = b.astype(jnp.float32)
        else:
            b_p = jnp.zeros((1, cout_pad), jnp.float32).at[:, :cout_l].set(b)
        padded.append((w_p, b_p))
        last_pad = cout_pad
    c_last = params[-1][0].shape[1]
    c_last_pad = last_pad

    # --- row (point) tile: multiple of 128 (lane-dense transposed store, bf16
    # sublane packing).  Keep >= 2 grid steps when possible so both v7x
    # TensorCores get work under the "parallel" semantics.
    tile_rows = min(max_tile_rows, _round_up(N, _LANE))
    if B == 1 and _round_up(N, tile_rows) // tile_rows < 2 and tile_rows > _LANE:
        tile_rows = _round_up(tile_rows // 2, _LANE)
    n_pad = _round_up(N, tile_rows)

    # --- cast/pad input only when actually needed (skip entirely when aligned)
    if x.dtype != jnp.bfloat16:
        x = x.astype(jnp.bfloat16)
    if (n_pad, c_in_pad) != (N, c_in):
        x = jnp.pad(x, ((0, 0), (0, n_pad - N), (0, c_in_pad - c_in)))

    grid = (B, n_pad // tile_rows)

    in_specs = [pl.BlockSpec((1, tile_rows, c_in_pad), lambda b, i: (b, i, 0))]
    flat_params = []
    for (w_p, b_p) in padded:
        flat_params += [w_p, b_p]
        in_specs += [pl.BlockSpec(w_p.shape, lambda b, i: (0, 0)),
                     pl.BlockSpec(b_p.shape, lambda b, i: (0, 0))]
    out_spec = pl.BlockSpec((1, c_last_pad, tile_rows), lambda b, i: (b, 0, i))

    # --- VMEM budget from actual buffer arithmetic (double-buffered in/out
    # tiles + params + f32 intermediates) with headroom; never request less
    # than the 32 MiB default so a tight estimate can't under-provision
    # Mosaic scratch, and never a flat oversized number on v7x's 64 MiB.
    in_tile = tile_rows * c_in_pad * 2
    out_tile = c_last_pad * tile_rows * 2
    param_bytes = sum(w.size * 2 + b.size * 4 for (w, b) in padded)
    max_cout = max(w.shape[1] for (w, _) in padded)
    interm = tile_rows * max_cout * 4
    vmem_need = 2 * (in_tile + out_tile) + 2 * param_bytes + 3 * interm
    vmem_limit = int(min(max(vmem_need * 1.5, 32 * 1024 * 1024), 100 * 1024 * 1024))

    # advisory cost estimate for XLA's scheduler
    flops = sum(2 * B * n_pad * w.shape[0] * w.shape[1] for (w, _) in padded)
    bytes_accessed = x.size * 2 + B * c_last_pad * n_pad * 2 + param_bytes

    out = pl.pallas_call(
        _make_fp_mlp_kernel(num_layers),
        out_shape=jax.ShapeDtypeStruct((B, c_last_pad, n_pad), jnp.bfloat16),
        grid=grid,
        in_specs=in_specs,
        out_specs=out_spec,
        compiler_params=pltpu.CompilerParams(
            dimension_semantics=("parallel", "parallel"),
            vmem_limit_bytes=vmem_limit),
        cost_estimate=pl.CostEstimate(
            flops=flops, transcendentals=0, bytes_accessed=bytes_accessed),
    )(x, *flat_params)
    return out[:, :c_last, :N]


# ----------------------------------------------------------------------------
# Module wrapper (deterministic synthetic parameters, eval-mode BatchNorm)
# ----------------------------------------------------------------------------

class PointNetFeaturePropagationPallas:
    def __init__(self, in_channel, mlp, key):
        # TODO(synk): BatchNorm is folded in eval mode (running stats); the
        # training-mode batch-statistics path of the PyTorch module is not implemented.
        self.params = []               # list of (w[Cin,Cout] f32, BN scale folded; bias[1,Cout] f32)
        last = in_channel
        eps = 1e-5
        for out_channel in mlp:
            key, k1, k2, k3, k4, k5, k6 = jax.random.split(key, 7)
            w_conv = 0.1 * jax.random.normal(k1, (out_channel, last), jnp.float32)
            b_conv = 0.1 * jax.random.normal(k2, (out_channel,), jnp.float32)
            gamma = 1.0 + 0.1 * jax.random.normal(k3, (out_channel,), jnp.float32)
            beta = 0.1 * jax.random.normal(k4, (out_channel,), jnp.float32)
            run_mean = 0.1 * jax.random.normal(k5, (out_channel,), jnp.float32)
            run_var = 1.0 + jnp.abs(jax.random.normal(k6, (out_channel,), jnp.float32))
            # fold eval-mode BN + conv bias into the weights (f32):
            #   y = x @ (W^T * scale) + bias
            scale = gamma / jnp.sqrt(run_var + eps)
            bias = (b_conv - run_mean) * scale + beta
            w_folded = (w_conv * scale[:, None]).T          # [Cin, Cout]
            self.params.append((w_folded, bias[None, :]))
            last = out_channel

    def __call__(self, xyz1, xyz2, points1, points2):
        # xyz1 [B,3,N], xyz2 [B,3,S], points1 [B,D1,N] or None, points2 [B,D2,S]
        new_points = _interpolate_and_concat(xyz1, xyz2, points1, points2)  # [B,N,Cin] bf16
        return fp_mlp_pallas(new_points, self.params)                       # [B,D',N] bf16


def _ref_forward(module, xyz1, xyz2, points1, points2):
    """Pure-JAX reference with the same bf16-matmul / f32-accumulate / bf16-out precision."""
    new_points = _interpolate_and_concat(xyz1, xyz2, points1, points2)      # [B,N,Cin] bf16
    B, N, c_in = new_points.shape
    h = new_points.reshape(B * N, c_in)
    acc = None
    for (w, b) in module.params:
        acc = jnp.dot(h, w.astype(jnp.bfloat16), preferred_element_type=jnp.float32)
        acc = jnp.maximum(acc + b, 0.0)
        h = acc.astype(jnp.bfloat16)
    out = acc.astype(jnp.bfloat16).reshape(B, N, -1)
    return jnp.transpose(out, (0, 2, 1))                                    # [B,D',N] bf16


if __name__ == "__main__":
    B, N, S = 2, 16, 8
    D1, D2 = 4, 6
    in_channel = D1 + D2
    mlp = [16, 32]

    key = jax.random.PRNGKey(0)
    k1, k2, k3, k4, kparam = jax.random.split(key, 5)
    xyz1 = jax.random.uniform(k1, (B, 3, N), jnp.float32)      # [B, 3, N]
    xyz2 = jax.random.uniform(k2, (B, 3, S), jnp.float32)      # [B, 3, S]
    points1 = jax.random.normal(k3, (B, D1, N), jnp.float32)   # [B, D1, N]
    points2 = jax.random.normal(k4, (B, D2, S), jnp.float32)   # [B, D2, S]

    module = PointNetFeaturePropagationPallas(in_channel, mlp, kparam)

    fwd = jax.jit(lambda a, b, c, d: module(a, b, c, d))
    out = fwd(xyz1, xyz2, points1, points2)
    jax.block_until_ready(out)
    assert out.shape == (B, mlp[-1], N), out.shape

    # correctness check vs a pure-JAX reference of the full forward
    ref = _ref_forward(module, xyz1, xyz2, points1, points2)
    out_f = out.astype(jnp.float32)
    ref_f = ref.astype(jnp.float32)
    err = float(jnp.max(jnp.abs(out_f - ref_f)))
    tol = 2e-2 * max(1.0, float(jnp.max(jnp.abs(ref_f))))
    assert err < tol, (err, tol)

    print("KERNEL_OK")
</pallas_src>

<mosaic_0001>
module attributes {stable_mosaic.version = 11 : i64} {
  func.func @kernel(%arg0: i32, %arg1: i32, %arg2: memref<1x128x128xbf16, #tpu.memory_space<vmem>>, %arg3: memref<128x128xbf16, #tpu.memory_space<vmem>>, %arg4: memref<1x128xf32, #tpu.memory_space<vmem>>, %arg5: memref<128x128xbf16, #tpu.memory_space<vmem>>, %arg6: memref<1x128xf32, #tpu.memory_space<vmem>>, %arg7: memref<1x128x128xbf16, #tpu.memory_space<vmem>>) attributes {dimension_semantics = [#tpu.dimension_semantics<parallel>, #tpu.dimension_semantics<parallel>], iteration_bounds = array<i64: 2, 1>, scalar_prefetch = 0 : i64, scratch_operands = 0 : i64, tpu.core_type = #tpu.core_type<tc>, window_params = [{transform_indices = @transform_0, window_bounds = array<i64: 1, 128, 128>}, {pipeline_mode = #tpu.pipeline_mode<synchronous>, transform_indices = @transform_1, window_bounds = array<i64: 128, 128>}, {pipeline_mode = #tpu.pipeline_mode<synchronous>, transform_indices = @transform_2, window_bounds = array<i64: 1, 128>}, {pipeline_mode = #tpu.pipeline_mode<synchronous>, transform_indices = @transform_3, window_bounds = array<i64: 128, 128>}, {pipeline_mode = #tpu.pipeline_mode<synchronous>, transform_indices = @transform_4, window_bounds = array<i64: 1, 128>}, {transform_indices = @transform_5, window_bounds = array<i64: 1, 128, 128>}]} {
    %c0 = arith.constant 0 : index
    %c0_0 = arith.constant 0 : index
    %c0_1 = arith.constant 0 : index
    %0 = vector.load %arg2[%c0, %c0_0, %c0_1] : memref<1x128x128xbf16, #tpu.memory_space<vmem>>, vector<1x128x128xbf16>
    %1 = vector.shape_cast %0 : vector<1x128x128xbf16> to vector<128x128xbf16>
    %c0_2 = arith.constant 0 : index
    %c0_3 = arith.constant 0 : index
    %2 = vector.load %arg3[%c0_2, %c0_3] : memref<128x128xbf16, #tpu.memory_space<vmem>>, vector<128x128xbf16>
    %c0_4 = arith.constant 0 : index
    %c0_5 = arith.constant 0 : index
    %3 = vector.load %arg4[%c0_4, %c0_5] : memref<1x128xf32, #tpu.memory_space<vmem>>, vector<1x128xf32>
    %cst = arith.constant dense<0.000000e+00> : vector<128x128xf32>
    %4 = tpu.matmul %1, %2, %cst {dimension_numbers = #tpu.dot_dimension_numbers<[1], [0], [0], [1], [0, 0, 1, 1], [], []>} : vector<128x128xbf16>, vector<128x128xbf16>, vector<128x128xf32> -> vector<128x128xf32>
    %5 = vector.broadcast %3 : vector<1x128xf32> to vector<128x128xf32>
    %6 = arith.addf %4, %5 : vector<128x128xf32>
    %cst_6 = arith.constant 0.000000e+00 : f32
    %7 = vector.broadcast %cst_6 : f32 to vector<128x128xf32>
    %8 = arith.maximumf %6, %7 : vector<128x128xf32>
    %9 = arith.truncf %8 : vector<128x128xf32> to vector<128x128xbf16>
    %c0_7 = arith.constant 0 : index
    %c0_8 = arith.constant 0 : index
    %10 = vector.load %arg5[%c0_7, %c0_8] : memref<128x128xbf16, #tpu.memory_space<vmem>>, vector<128x128xbf16>
    %c0_9 = arith.constant 0 : index
    %c0_10 = arith.constant 0 : index
    %11 = vector.load %arg6[%c0_9, %c0_10] : memref<1x128xf32, #tpu.memory_space<vmem>>, vector<1x128xf32>
    %cst_11 = arith.constant dense<0.000000e+00> : vector<128x128xf32>
    %12 = tpu.matmul %9, %10, %cst_11 {dimension_numbers = #tpu.dot_dimension_numbers<[1], [0], [0], [1], [0, 0, 1, 1], [], []>} : vector<128x128xbf16>, vector<128x128xbf16>, vector<128x128xf32> -> vector<128x128xf32>
    %13 = vector.broadcast %11 : vector<1x128xf32> to vector<128x128xf32>
    %14 = arith.addf %12, %13 : vector<128x128xf32>
    %cst_12 = arith.constant 0.000000e+00 : f32
    %15 = vector.broadcast %cst_12 : f32 to vector<128x128xf32>
    %16 = arith.maximumf %14, %15 : vector<128x128xf32>
    %17 = tpu.transpose %16, [1, 0] : vector<128x128xf32> -> vector<128x128xf32>
    %18 = arith.truncf %17 : vector<128x128xf32> to vector<128x128xbf16>
    %c0_13 = arith.constant 0 : index
    %c0_14 = arith.constant 0 : index
    %c0_15 = arith.constant 0 : index
    %19 = vector.load %arg7[%c0_13, %c0_14, %c0_15] : memref<1x128x128xbf16, #tpu.memory_space<vmem>>, vector<1x128x128xbf16>
    %20 = vector.shape_cast %19 : vector<1x128x128xbf16> to vector<128x128xbf16>
    %21 = vector.shape_cast %18 : vector<128x128xbf16> to vector<1x128x128xbf16>
    tpu.vector_store %arg7[%c0_13, %c0_14, %c0_15], %21 {strides = array<i32>} : memref<1x128x128xbf16, #tpu.memory_space<vmem>>, vector<1x128x128xbf16>,
    return
  }
  func.func @transform_0(%arg0: i32, %arg1: i32) -> (i32, i32, i32) {
    %c0_i32 = arith.constant 0 : i32
    %c0_i32_0 = arith.constant 0 : i32
    return %arg0, %arg1, %c0_i32 : i32, i32, i32
  }
  func.func @transform_1(%arg0: i32, %arg1: i32) -> (i32, i32) {
    %c0_i32 = arith.constant 0 : i32
    %c0_i32_0 = arith.constant 0 : i32
    %c0_i32_1 = arith.constant 0 : i32
    return %c0_i32, %c0_i32_0 : i32, i32
  }
  func.func @transform_2(%arg0: i32, %arg1: i32) -> (i32, i32) {
    %c0_i32 = arith.constant 0 : i32
    %c0_i32_0 = arith.constant 0 : i32
    %c0_i32_1 = arith.constant 0 : i32
    return %c0_i32, %c0_i32_0 : i32, i32
  }
  func.func @transform_3(%arg0: i32, %arg1: i32) -> (i32, i32) {
    %c0_i32 = arith.constant 0 : i32
    %c0_i32_0 = arith.constant 0 : i32
    %c0_i32_1 = arith.constant 0 : i32
    return %c0_i32, %c0_i32_0 : i32, i32
  }
  func.func @transform_4(%arg0: i32, %arg1: i32) -> (i32, i32) {
    %c0_i32 = arith.constant 0 : i32
    %c0_i32_0 = arith.constant 0 : i32
    %c0_i32_1 = arith.constant 0 : i32
    return %c0_i32, %c0_i32_0 : i32, i32
  }
  func.func @transform_5(%arg0: i32, %arg1: i32) -> (i32, i32, i32) {
    %c0_i32 = arith.constant 0 : i32
    %c0_i32_0 = arith.constant 0 : i32
    return %arg0, %c0_i32, %arg1 : i32, i32, i32
  }
}

</mosaic_0001>

<bundles_post_ra>
// kernel: _lambda_.1
= control target key start
LH: loop header
LB: loop body
LE: loop exit
PB: predicated region body
PF: predicated region fallthrough
CT: control target
= control target key end

     0   :  { %s1213_s18 = smov 0   ;;  %s1215_s19 = smov 0   ;;  %s1327_s0 = inlined_call_operand.vmem [shape: bf16[2,128,128], index: 0, kind: input, shape index: {}]   ;;  %s1328_s1 = inlined_call_operand.vmem [shape: bf16[128,128], index: 1, kind: input, shape index: {}]   ;;  %s1329_s2 = inlined_call_operand.vmem [shape: f32[1,128], index: 2, kind: input, shape index: {}]   ;;  %s1330_s3 = inlined_call_operand.vmem [shape: bf16[128,128], index: 3, kind: input, shape index: {}]   ;;  %s1331_s4 = inlined_call_operand.vmem [shape: f32[1,128], index: 4, kind: input, shape index: {}]   ;;  %s1332_s5 = inlined_call_operand.vmem [shape: bf16[2,128,128], index: 5, kind: output, shape index: {}]  }
   0x1   :  { %s1217_s20 = smov 0  }
   0x2 LB: > { %s27_s21 = sadd.s32 1, %s1177_s19  ;;  %p901_p0 = scmp.ge.s32.totalorder %s1181_s20, 1  ;;  %s1181_s20 = sphi %s1217_s20, %s15_s20   ;;  %s1177_s19 = sphi %s1215_s19, %s1334_s19   ;;  %s1173_s18 = sphi %s1213_s18, %s1333_s18  }
   0x3   : > { %p29_p1 = scmp.ge.s32.totalorder %s27_s21, 2  ;;  %p208_p2 = scmp.lt.s32.totalorder %s1181_s20, 3 }
   0x5   : > { %s1336_s21 = smov (%p29_p1, %s27_s21), 0  ;;  %p209_p3 = pnand %p901_p0, %p208_p2 }
   0x6   : > { %v1135_v0 = vld [vmem:[%s1328_s1] sm:$0xff] (!%p209_p3)   ;;  %p244_p4 = scmp.lt.s32.totalorder (!%p209_p3), %s1173_s18, 1  ;;  %v1136_v1 = vld [vmem:[%s1328_s1 + $0x8] sm:$0xff] (!%p209_p3)   ;;  %v1137_v2 = vld [vmem:[%s1328_s1 + $0x10] sm:$0xff] (!%p209_p3)  }
   0x7   : > { %212 = sbr.rel (%p209_p3) target bundleno = 670 (0x29e), region = 40  ;;  %1047 = vmatprep.subr.bf16.mxu0 (!%p209_p3), %v1135_v0  ;;  %v1138_v3 = vld [vmem:[%s1328_s1 + $0x18] sm:$0xff] (!%p209_p3)   ;;  %v1139_v5 = vld [vmem:[%s1328_s1 + $0x20] sm:$0xff] (!%p209_p3)   ;;  %v1140_v6 = vld [vmem:[%s1328_s1 + $0x28] sm:$0xff] (!%p209_p3)  }
   0x8   : > { %1048 = vmatpush3.bf16.msra.mxu0 (!%p209_p3), %v1135_v0  ;;  %v1151_v7 = vld [vmem:[%s1330_s3] sm:$0xff] (!%p209_p3)   ;;  %v1152_v8 = vld [vmem:[%s1330_s3 + $0x8] sm:$0xff] (!%p209_p3)   ;;  %v1141_v9 = vld [vmem:[%s1328_s1 + $0x30] sm:$0xff] (!%p209_p3)  }
   0x9   : > { %1049 = vmatprep.subr.bf16.mxu0 (!%p209_p3), %v1136_v1  ;;  %1079 = vmatprep.subr.bf16.mxu1 (!%p209_p3), %v1151_v7  ;;  %v1153_v10 = vld [vmem:[%s1330_s3 + $0x10] sm:$0xff] (!%p209_p3)   ;;  %v1142_v11 = vld [vmem:[%s1328_s1 + $0x38] sm:$0xff] (!%p209_p3)   ;;  %v1155_v13 = vld [vmem:[%s1330_s3 + $0x20] sm:$0xff] (!%p209_p3)  }
   0xa   : > { %1080 = vmatpush3.bf16.msra.mxu1 (!%p209_p3), %v1151_v7  ;;  %v1154_v12 = vld [vmem:[%s1330_s3 + $0x18] sm:$0xff] (!%p209_p3)   ;;  %v1156_v16 = vld [vmem:[%s1330_s3 + $0x28] sm:$0xff] (!%p209_p3)   ;;  %v1157_v22 = vld [vmem:[%s1330_s3 + $0x30] sm:$0xff] (!%p209_p3)  }
   0xb   : > { %1081 = vmatprep.subr.bf16.mxu1 (!%p209_p3), %v1152_v8  ;;  %v1158_v23 = vld [vmem:[%s1330_s3 + $0x38] sm:$0xff] (!%p209_p3)   ;;  %v906_v24 = vld [vmem:[%s1329_s2] ss:$0 sm:$0xff] (!%p209_p3) }
   0xc   : > { %1050 = vmatpush3.bf16.msra.mxu0 (!%p209_p3), %v1136_v1 }
   0xd   : > { %1051 = vmatprep.subr.bf16.mxu0 (!%p209_p3), %v1137_v2 }
   0xe   : > { %s1338_s18 = smov (!%p244_p4, %s1173_s18), 1  ;;  %1082 = vmatpush3.bf16.msra.mxu1 %v1152_v8 }
   0xf   : > { %s950_s28 = sshll.u32 %s1338_s18, 6  ;;  %1083 = vmatprep.subr.bf16.mxu1 %v1153_v10 }
  0x10   : > { %s1248_s6 = scalar_lea.vmem %s1327_s0, %s950_s28  ;;  %1052 = vmatpush3.bf16.msra.mxu0 %v1137_v2  ;;  %s1308_s23 = scalar_lea.vmem %s1332_s5, %s950_s28 }
  0x11   : > { %v1143_v4 = vld [vmem:[%s1248_s6] sm:$0xff]   ;;  %1053 = vmatprep.subr.bf16.mxu0 %v1138_v3  ;;  %v1144_v14 = vld [vmem:[%s1248_s6 + $0x8] sm:$0xff]   ;;  %v1145_v15 = vld [vmem:[%s1248_s6 + $0x10] sm:$0xff]  }
  0x12   : > { %1063 = vmatprep.mubr.bf16.mxu0 %v1143_v4  ;;  %1084 = vmatpush3.bf16.msra.mxu1 %v1153_v10  ;;  %v1146_v17 = vld [vmem:[%s1248_s6 + $0x18] sm:$0xff]   ;;  %v1147_v18 = vld [vmem:[%s1248_s6 + $0x20] sm:$0xff]   ;;  %v1148_v19 = vld [vmem:[%s1248_s6 + $0x28] sm:$0xff]  }
  0x13   : > { %1085 = vmatprep.subr.bf16.mxu1 %v1154_v12  ;;  %v1149_v20 = vld [vmem:[%s1248_s6 + $0x30] sm:$0xff]   ;;  %v1150_v21 = vld [vmem:[%s1248_s6 + $0x38] sm:$0xff]  }
  0x14   : > { %1054 = vmatpush3.bf16.msra.mxu0 %v1138_v3 }
  0x15   : > { %1055 = vmatprep.subr.bf16.mxu0 %v1139_v5 }
  0x16   : > { %1086 = vmatpush3.bf16.msra.mxu1 %v1154_v12 }
  0x17   : > { %1087 = vmatprep.subr.bf16.mxu1 %v1155_v13 }
  0x18   : > { %1056 = vmatpush3.bf16.msra.mxu0 %v1139_v5 }
  0x19   : > { %1057 = vmatprep.subr.bf16.mxu0 %v1140_v6 }
  0x1a   : > { %1088 = vmatpush3.bf16.msra.mxu1 %v1155_v13 }
  0x1b   : > { %1089 = vmatprep.subr.bf16.mxu1 %v1156_v16 }
  0x1c   : > { %1058 = vmatpush3.bf16.msra.mxu0 %v1140_v6 }
  0x1d   : > { %1059 = vmatprep.subr.bf16.mxu0 %v1141_v9 }
  0x1e   : > { %1090 = vmatpush3.bf16.msra.mxu1 %v1156_v16 }
  0x1f   : > { %1091 = vmatprep.subr.bf16.mxu1 %v1157_v22 }
  0x20   : > { %1060 = vmatpush3.bf16.msra.mxu0 %v1141_v9 }
  0x21   : > { %1061 = vmatprep.subr.bf16.mxu0 %v1142_v11 }
  0x22   : > { %1092 = vmatpush3.bf16.msra.mxu1 %v1157_v22 }
  0x23   : > { %1093 = vmatprep.subr.bf16.mxu1 %v1158_v23 }
  0x24   : > { %1062 = vmatpush3.bf16.msra.mxu0 %v1142_v11 }
  0x26   : > { %1094 = vmatpush3.bf16.msra.mxu1 %v1158_v23 }
  0x27   : > { %1064 = vmatmul.mubr.bf16.vlgmr.msra.gmra.mrb[0].mxu0 %v1144_v14 }
  0x28   : > { %1067 = vmatprep.mubr.bf16.mxu0 %v1145_v15 }
  0x2f   : > { %1068 = vmatmul.mubr.bf16.gmra.mrb[4].mxu0 %v1146_v17  ;;  %v923_v17 = vld [vmem:[%s1331_s4] ss:$0 sm:$0xff] }
  0x30   : > { %1071 = vmatprep.mubr.bf16.mxu0 %v1147_v18 }
  0x37   : > { %1072 = vmatmul.mubr.bf16.gmra.mrb[8].mxu0 %v1148_v19 }
  0x38   : > { %1075 = vmatprep.mubr.bf16.mxu0 %v1149_v20 }
  0x3f   : > { %1076 = vmatmul.mubr.bf16.gmra.mrb[12].mxu0 %v1150_v21 }
  0xfa   : > { %v1065_v25 = vpop.f32.mrb[0].mxu0 }
  0xfb   : > { %v440_v26 = vadd.f32 %v1065_v25, %v906_v24  ;;  %v431_v27 = vpop.f32.mrb[1].mxu0 }
  0xfc   : > { %v432_v28 = vadd.f32 %v906_v24, %v431_v27  ;;  %v1066_v29 = vpop.f32.mrb[2].mxu0 }
  0xfd   : > { %v443_v30 = vadd.f32 %v1066_v29, %v906_v24  ;;  %v434_v31 = vpop.f32.mrb[3].mxu0  ;;  %v496_v33 = vmax.f32 %v440_v26, 0.0 }
  0xfe   : > { %v435_v32 = vadd.f32 %v906_v24, %v434_v31  ;;  %v494_v35 = vmax.f32 %v432_v28, 0.0 }
  0xff   : > { %v497_v34 = vmax.f32 %v443_v30, 0.0 }
 0x100   : > { %v495_v36 = vmax.f32 %v435_v32, 0.0 }
 0x101   : > { %v511_v37 = vpack.c.bf16 %v497_v34, %v496_v33 }
 0x102   : > { %v1069_v38 = vpop.f32.mrb[4].mxu0  ;;  %v510_v39 = vpack.c.bf16 %v495_v36, %v494_v35 }
 0x103   : > { %v456_v40 = vadd.f32 %v1069_v38, %v906_v24  ;;  %v447_v41 = vpop.f32.mrb[5].mxu0 }
 0x104   : > { %v448_v42 = vadd.f32 %v906_v24, %v447_v41  ;;  %1095 = vmatprep.mubr.bf16.mxu1 %v510_v39  ;;  %v1070_v43 = vpop.f32.mrb[6].mxu0 }
 0x105   : > { %v500_v44 = vmax.f32 %v456_v40, 0.0  ;;  %v459_v45 = vadd.f32 %v1070_v43, %v906_v24  ;;  %1096 = vmatmul.mubr.bf16.vlgmr.msra.gmra.mrb[0].mxu1 %v511_v37  ;;  %v450_v46 = vpop.f32.mrb[7].mxu0 }
 0x106   : > { %v498_v47 = vmax.f32 %v448_v42, 0.0  ;;  %v451_v48 = vadd.f32 %v906_v24, %v450_v46 }
 0x107   : > { %v501_v49 = vmax.f32 %v459_v45, 0.0 }
 0x108   : > { %v499_v50 = vmax.f32 %v451_v48, 0.0 }
 0x109   : > { %v513_v51 = vpack.c.bf16 %v501_v49, %v500_v44 }
 0x10a   : > { %v512_v52 = vpack.c.bf16 %v499_v50, %v498_v47  ;;  %v1073_v53 = vpop.f32.mrb[8].mxu0 }
 0x10b   : > { %v472_v54 = vadd.f32 %v1073_v53, %v906_v24  ;;  %v463_v55 = vpop.f32.mrb[9].mxu0 }
 0x10c   : > { %1099 = vmatprep.mubr.bf16.mxu1 %v512_v52  ;;  %v464_v56 = vadd.f32 %v906_v24, %v463_v55  ;;  %v1074_v57 = vpop.f32.mrb[10].mxu0 }
 0x10d   : > { %1100 = vmatmul.mubr.bf16.gmra.mrb[4].mxu1 %v513_v51  ;;  %v504_v58 = vmax.f32 %v472_v54, 0.0  ;;  %v475_v59 = vadd.f32 %v1074_v57, %v906_v24  ;;  %v466_v60 = vpop.f32.mrb[11].mxu0 }
 0x10e   : > { %v502_v61 = vmax.f32 %v464_v56, 0.0  ;;  %v467_v62 = vadd.f32 %v906_v24, %v466_v60 }
 0x10f   : > { %v505_v63 = vmax.f32 %v475_v59, 0.0 }
 0x110   : > { %v503_v0 = vmax.f32 %v467_v62, 0.0 }
 0x111   : > { %v515_v1 = vpack.c.bf16 %v505_v63, %v504_v58 }
 0x112   : > { %v514_v2 = vpack.c.bf16 %v503_v0, %v502_v61  ;;  %v1077_v3 = vpop.f32.mrb[12].mxu0 }
 0x113   : > { %v488_v4 = vadd.f32 %v1077_v3, %v906_v24  ;;  %v479_v5 = vpop.f32.mrb[13].mxu0 }
 0x114   : > { %1103 = vmatprep.mubr.bf16.mxu1 %v514_v2  ;;  %v480_v6 = vadd.f32 %v906_v24, %v479_v5  ;;  %v1078_v7 = vpop.f32.mrb[14].mxu0 }
 0x115   : > { %1104 = vmatmul.mubr.bf16.gmra.mrb[8].mxu1 %v515_v1  ;;  %v508_v8 = vmax.f32 %v488_v4, 0.0  ;;  %v491_v9 = vadd.f32 %v1078_v7, %v906_v24  ;;  %v482_v10 = vpop.f32.mrb[15].mxu0 }
 0x116   : > { %v506_v11 = vmax.f32 %v480_v6, 0.0  ;;  %v483_v12 = vadd.f32 %v906_v24, %v482_v10 }
 0x117   : > { %v509_v13 = vmax.f32 %v491_v9, 0.0 }
 0x118   : > { %v507_v14 = vmax.f32 %v483_v12, 0.0 }
 0x119   : > { %v517_v15 = vpack.c.bf16 %v509_v13, %v508_v8 }
 0x11a   : > { %v516_v16 = vpack.c.bf16 %v507_v14, %v506_v11 }
 0x11c   : > { %1107 = vmatprep.mubr.bf16.mxu1 %v516_v16 }
 0x11d   : > { %1108 = vmatmul.mubr.bf16.gmra.mrb[12].mxu1 %v517_v15 }
 0x1d8   : > { %v1097_v18 = vpop.f32.mrb[0].mxu1 }
 0x1d9   : > { %v623_v19 = vpop.f32.mrb[1].mxu1  ;;  %v632_v26 = vadd.f32 %v1097_v18, %v923_v17 }
 0x1da   : > { %v1098_v20 = vpop.f32.mrb[2].mxu1  ;;  %v624_v21 = vadd.f32 %v923_v17, %v623_v19 }
 0x1db   : > { %v626_v22 = vpop.f32.mrb[3].mxu1  ;;  %v688_v31 = vmax.f32 %v632_v26, 0.0  ;;  %v635_v32 = vadd.f32 %v1098_v20, %v923_v17 }
 0x1dc   : > { %v627_v23 = vadd.f32 %v923_v17, %v626_v22  ;;  %v686_v25 = vmax.f32 %v624_v21, 0.0 }
 0x1dd   : > { %v689_v33 = vmax.f32 %v635_v32, 0.0 }
 0x1de   : > { %702 = vxpose.xlu0.b32.start [1/16] %v686_v25, 128  ;;  %v687_v24 = vmax.f32 %v627_v23, 0.0 }
 0x1e0   : > { %v1101_v27 = vpop.f32.mrb[4].mxu1 }
 0x1e1   : > { %v639_v28 = vpop.f32.mrb[5].mxu1  ;;  %v648_v41 = vadd.f32 %v1101_v27, %v923_v17 }
 0x1e2   : > { %703 = vxpose.xlu0.b32.cont [2/16] %v687_v24, 128  ;;  %v1102_v29 = vpop.f32.mrb[6].mxu1  ;;  %v640_v34 = vadd.f32 %v923_v17, %v639_v28 }
 0x1e3   : > { %v642_v30 = vpop.f32.mrb[7].mxu1  ;;  %v692_v47 = vmax.f32 %v648_v41, 0.0  ;;  %v651_v48 = vadd.f32 %v1102_v29, %v923_v17 }
 0x1e4   : > { %v690_v39 = vmax.f32 %v640_v34, 0.0  ;;  %v643_v40 = vadd.f32 %v923_v17, %v642_v30 }
 0x1e5   : > { %v693_v49 = vmax.f32 %v651_v48, 0.0 }
 0x1e6   : > { %704 = vxpose.xlu0.b32.cont [3/16] %v688_v31, 128  ;;  %v691_v42 = vmax.f32 %v643_v40, 0.0 }
 0x1e8   : > { %v1105_v35 = vpop.f32.mrb[8].mxu1 }
 0x1e9   : > { %v655_v36 = vpop.f32.mrb[9].mxu1  ;;  %v664_v53 = vadd.f32 %v1105_v35, %v923_v17 }
 0x1ea   : > { %705 = vxpose.xlu0.b32.cont [4/16] %v689_v33, 128  ;;  %v1106_v37 = vpop.f32.mrb[10].mxu1  ;;  %v656_v50 = vadd.f32 %v923_v17, %v655_v36 }
 0x1eb   : > { %v658_v38 = vpop.f32.mrb[11].mxu1  ;;  %v696_v55 = vmax.f32 %v664_v53, 0.0  ;;  %v667_v56 = vadd.f32 %v1106_v37, %v923_v17 }
 0x1ec   : > { %v694_v51 = vmax.f32 %v656_v50, 0.0  ;;  %v659_v52 = vadd.f32 %v923_v17, %v658_v38 }
 0x1ed   : > { %v697_v57 = vmax.f32 %v667_v56, 0.0 }
 0x1ee   : > { %706 = vxpose.xlu0.b32.cont [5/16] %v690_v39, 128  ;;  %v695_v54 = vmax.f32 %v659_v52, 0.0 }
 0x1f0   : > { %v1109_v43 = vpop.f32.mrb[12].mxu1 }
 0x1f1   : > { %v671_v44 = vpop.f32.mrb[13].mxu1  ;;  %v680_v61 = vadd.f32 %v1109_v43, %v923_v17 }
 0x1f2   : > { %707 = vxpose.xlu0.b32.cont [6/16] %v691_v42, 128  ;;  %v1110_v45 = vpop.f32.mrb[14].mxu1  ;;  %v672_v58 = vadd.f32 %v923_v17, %v671_v44 }
 0x1f3   : > { %v674_v46 = vpop.f32.mrb[15].mxu1  ;;  %v700_v63 = vmax.f32 %v680_v61, 0.0  ;;  %v683_v0 = vadd.f32 %v1110_v45, %v923_v17 }
 0x1f4   : > { %v698_v59 = vmax.f32 %v672_v58, 0.0  ;;  %v675_v60 = vadd.f32 %v923_v17, %v674_v46 }
 0x1f5   : > { %v701_v1 = vmax.f32 %v683_v0, 0.0 }
 0x1f6   : > { %708 = vxpose.xlu0.b32.cont [7/16] %v692_v47, 128  ;;  %v699_v62 = vmax.f32 %v675_v60, 0.0 }
 0x1fa   : > { %709 = vxpose.xlu0.b32.cont [8/16] %v693_v49, 128 }
 0x1fe   : > { %710 = vxpose.xlu0.b32.cont [9/16] %v694_v51, 128 }
 0x202   : > { %711 = vxpose.xlu0.b32.cont [10/16] %v695_v54, 128 }
 0x206   : > { %712 = vxpose.xlu0.b32.cont [11/16] %v696_v55, 128 }
 0x20a   : > { %713 = vxpose.xlu0.b32.cont [12/16] %v697_v57, 128 }
 0x20e   : > { %714 = vxpose.xlu0.b32.cont [13/16] %v698_v59, 128 }
 0x212   : > { %715 = vxpose.xlu0.b32.cont [14/16] %v699_v62, 128 }
 0x216   : > { %716 = vxpose.xlu0.b32.cont [15/16] %v700_v63, 128 }
 0x21a   : > { %717 = vxpose.xlu0.b32.end [16/16] %v701_v1, 128 }
 0x25e   : > { %v718_v2 = vpop.trf.xlu0 }
 0x262   : > { %v719_v3 = vpop.trf.xlu0 }
 0x263   : > { %v971_v4 = vpack.c.bf16 %v719_v3, %v718_v2 }
 0x265   : > { %972 = vst [vmem:[%s1308_s23] sm:$0xff] %v971_v4  }
 0x266   : > { %v720_v5 = vpop.trf.xlu0 }
 0x26a   : > { %v721_v6 = vpop.trf.xlu0 }
 0x26b   : > { %v976_v7 = vpack.c.bf16 %v721_v6, %v720_v5 }
 0x26d   : > { %1008 = vst [vmem:[%s1308_s23 + $0x8] sm:$0xff] %v976_v7  }
 0x26e   : > { %v722_v8 = vpop.trf.xlu0 }
 0x272   : > { %v723_v9 = vpop.trf.xlu0 }
 0x273   : > { %v981_v10 = vpack.c.bf16 %v723_v9, %v722_v8 }
 0x275   : > { %1009 = vst [vmem:[%s1308_s23 + $0x10] sm:$0xff] %v981_v10  }
 0x276   : > { %v724_v11 = vpop.trf.xlu0 }
 0x27a   : > { %v725_v12 = vpop.trf.xlu0 }
 0x27b   : > { %v986_v13 = vpack.c.bf16 %v725_v12, %v724_v11 }
 0x27d   : > { %1010 = vst [vmem:[%s1308_s23 + $0x18] sm:$0xff] %v986_v13  }
 0x27e   : > { %v726_v14 = vpop.trf.xlu0 }
 0x282   : > { %v727_v15 = vpop.trf.xlu0 }
 0x283   : > { %v991_v16 = vpack.c.bf16 %v727_v15, %v726_v14 }
 0x285   : > { %1011 = vst [vmem:[%s1308_s23 + $0x20] sm:$0xff] %v991_v16  }
 0x286   : > { %v728_v17 = vpop.trf.xlu0 }
 0x28a   : > { %v729_v18 = vpop.trf.xlu0 }
 0x28b   : > { %v996_v19 = vpack.c.bf16 %v729_v18, %v728_v17 }
 0x28d   : > { %1012 = vst [vmem:[%s1308_s23 + $0x28] sm:$0xff] %v996_v19  }
 0x28e   : > { %v730_v20 = vpop.trf.xlu0 }
 0x292   : > { %v731_v21 = vpop.trf.xlu0 }
 0x293   : > { %v1001_v22 = vpack.c.bf16 %v731_v21, %v730_v20 }
 0x295   : > { %1013 = vst [vmem:[%s1308_s23 + $0x30] sm:$0xff] %v1001_v22  }
 0x296   : > { %v732_v23 = vpop.trf.xlu0 }
 0x29a   : > { %v733_v25 = vpop.trf.xlu0 }
 0x29b   : > { %v1006_v26 = vpack.c.bf16 %v733_v25, %v732_v23 }
 0x29d   : > { %1014 = vst [vmem:[%s1308_s23 + $0x38] sm:$0xff] %v1006_v26  }
 0x29e PF: > { %s15_s20 = sadd.s32 1, %s1181_s20   ;;  %s1333_s18 = smov %s1177_s19 }
 0x29f   : > { %p12_p5 = scmp.ge.s32.totalorder %s15_s20, 4   ;;  %s1334_s19 = smov %s1336_s21 }
 0x2a1   :  { %14 = sbr.rel (!%p12_p5) target bundleno = 2 (0x2), region = 70 }

</bundles_post_ra>
